<compile_context>
chip_gen: v6e
topology: v6e:2x2x1
jax: 0.10.0
libtpu: 0.0.40
codegen_flags: <defaults>
</compile_context>

<pallas_src>
import jax
import jax.numpy as jnp
from jax.experimental import pallas as pl
from jax.experimental.pallas import tpu as pltpu

_LANE = 128      # vreg lane width
_SUBLANE = 8     # vreg sublane width


def _round_up(x, m):
    return (x + m - 1) // m * m


# -----------------------------------------------------------------------------
# Pallas kernel: fused 3-layer actor MLP over one batch tile.
#   x_ref : (TILE_B, S_p) f32          w*_ref : bf16, 128-aligned, VMEM-resident
#   b*_ref: (1, ·) f32                 o_ref  : (TILE_B, A_p) f32 (lane-dense)
# -----------------------------------------------------------------------------
def _actor_mlp_kernel(x_ref, w1_ref, b1_ref, w2_ref, b2_ref, w3_ref, b3_ref,
                      o_ref):
    x = x_ref[...].astype(jnp.bfloat16)
    # Layer 1: Linear + ReLU   (bf16 MXU operands, f32 accumulation)
    h1 = jnp.dot(x, w1_ref[...], preferred_element_type=jnp.float32)
    h1 = jnp.maximum(h1 + b1_ref[...], 0.0)
    # Layer 2: Linear + ReLU
    h2 = jnp.dot(h1.astype(jnp.bfloat16), w2_ref[...],
                 preferred_element_type=jnp.float32)
    h2 = jnp.maximum(h2 + b2_ref[...], 0.0)
    # Layer 3: Linear + tanh (EUP transcendental, f32)
    h3 = jnp.dot(h2.astype(jnp.bfloat16), w3_ref[...],
                 preferred_element_type=jnp.float32)
    o_ref[...] = jnp.tanh(h3 + b3_ref[...]).astype(o_ref.dtype)


def _actor_forward(state, params):
    """Fused actor MLP.

    state  : (B, S) float
    params : dict w1 (S,H), b1 (1,H), w2 (H,H), b2 (1,H), w3 (H,A), b3 (1,A)
    returns: (B, A) float32 in (-1, 1)
    """
    B, S = state.shape
    H = params["w1"].shape[1]
    A = params["w3"].shape[1]

    # Pad feature dims to the 128-lane vreg width; pad batch to the tile size.
    S_p = _round_up(S, _LANE)
    H_p = _round_up(H, _LANE)
    A_p = _round_up(A, _LANE)
    tile_b = min(256, _round_up(B, _SUBLANE))
    B_p = _round_up(B, tile_b)

    f32, bf16 = jnp.float32, jnp.bfloat16
    x_p = jnp.pad(state.astype(f32), ((0, B_p - B), (0, S_p - S)))
    w1 = jnp.pad(params["w1"], ((0, S_p - S), (0, H_p - H))).astype(bf16)
    b1 = jnp.pad(params["b1"], ((0, 0), (0, H_p - H))).astype(f32)
    w2 = jnp.pad(params["w2"], ((0, H_p - H), (0, H_p - H))).astype(bf16)
    b2 = jnp.pad(params["b2"], ((0, 0), (0, H_p - H))).astype(f32)
    w3 = jnp.pad(params["w3"], ((0, H_p - H), (0, A_p - A))).astype(bf16)
    b3 = jnp.pad(params["b3"], ((0, 0), (0, A_p - A))).astype(f32)

    grid = (B_p // tile_b,)

    def resident(shape):   # weights/biases: same block every step -> stay in VMEM
        return pl.BlockSpec(shape, lambda i: (0, 0))

    flops = 2 * B_p * (S_p * H_p + H_p * H_p + H_p * A_p)
    bytes_accessed = (x_p.size * 4
                      + (w1.size + w2.size + w3.size) * 2
                      + (b1.size + b2.size + b3.size) * 4
                      + B_p * A_p * 4)

    out = pl.pallas_call(
        _actor_mlp_kernel,
        out_shape=jax.ShapeDtypeStruct((B_p, A_p), jnp.float32),
        grid=grid,
        in_specs=[
            pl.BlockSpec((tile_b, S_p), lambda i: (i, 0)),   # streamed state
            resident((S_p, H_p)), resident((1, H_p)),
            resident((H_p, H_p)), resident((1, H_p)),
            resident((H_p, A_p)), resident((1, A_p)),
        ],
        out_specs=pl.BlockSpec((tile_b, A_p), lambda i: (i, 0)),  # lane-dense
        compiler_params=pltpu.CompilerParams(
            dimension_semantics=("parallel",)),
        cost_estimate=pl.CostEstimate(
            flops=flops,
            transcendentals=B_p * A_p,
            bytes_accessed=bytes_accessed),
    )(x_p, w1, b1, w2, b2, w3, b3)

    return out[:B, :A]


actor_forward = jax.jit(_actor_forward)


# -----------------------------------------------------------------------------
# Deterministic parameter init (mimics torch.nn.Linear default: U(-k, k),
# k = 1/sqrt(fan_in)); weights stored pre-transposed as (in, out).
# -----------------------------------------------------------------------------
def init_actor_params(key, state_dim, hidden, action_dim):
    ks = jax.random.split(key, 6)

    def lin(kw, kb, fan_in, fan_out):
        k = 1.0 / jnp.sqrt(jnp.float32(fan_in))
        w = jax.random.uniform(kw, (fan_in, fan_out), jnp.float32, -k, k)
        b = jax.random.uniform(kb, (1, fan_out), jnp.float32, -k, k)
        return w, b

    w1, b1 = lin(ks[0], ks[1], state_dim, hidden)
    w2, b2 = lin(ks[2], ks[3], hidden, hidden)
    w3, b3 = lin(ks[4], ks[5], hidden, action_dim)
    return {"w1": w1, "b1": b1, "w2": w2, "b2": b2, "w3": w3, "b3": b3}


class ActorCriticNet:
    """JAX/Pallas port of drl.network.head.ActorCriticNet (forward == actor)."""

    def __init__(self, actor_params, critic_params=None,
                 actor_opt=None, critic_opt=None, seed=None):
        self.actor_params = actor_params
        self.critic_params = critic_params
        self.actor_opt = actor_opt
        self.critic_opt = critic_opt
        self.seed = seed

    def __call__(self, state):          # forward(state) -> actor(state)
        return self.actor(state)

    def actor(self, state):
        return actor_forward(state, self.actor_params)


# -----------------------------------------------------------------------------
# Pure-JAX f32 reference for verification
# -----------------------------------------------------------------------------
def actor_reference(state, p):
    h1 = jnp.maximum(state @ p["w1"] + p["b1"], 0.0)
    h2 = jnp.maximum(h1 @ p["w2"] + p["b2"], 0.0)
    return jnp.tanh(h2 @ p["w3"] + p["b3"])


if __name__ == "__main__":
    B, STATE_DIM, HIDDEN, ACTION_DIM = 8, 32, 64, 8

    key = jax.random.PRNGKey(0)
    k_param, k_state = jax.random.split(key)

    params = init_actor_params(k_param, STATE_DIM, HIDDEN, ACTION_DIM)
    state = jax.random.normal(k_state, (B, STATE_DIM), jnp.float32)

    net = ActorCriticNet(actor_params=params, seed=0)

    out = net(state)
    out = jax.block_until_ready(out)

    ref = actor_reference(state, params)
    assert out.shape == (B, ACTION_DIM), out.shape
    # bf16 matmul operands (f32 accumulation) -> loosened tolerance vs f32 ref.
    max_err = float(jnp.max(jnp.abs(out - ref)))
    assert jnp.allclose(out, ref, atol=3e-2, rtol=0.0), max_err

    print("KERNEL_OK")
</pallas_src>

<mosaic_0001>
module attributes {stable_mosaic.version = 11 : i64} {
  func.func @_actor_mlp_kernel(%arg0: i32, %arg1: memref<8x128xf32, #tpu.memory_space<vmem>>, %arg2: memref<128x128xbf16, #tpu.memory_space<vmem>>, %arg3: memref<1x128xf32, #tpu.memory_space<vmem>>, %arg4: memref<128x128xbf16, #tpu.memory_space<vmem>>, %arg5: memref<1x128xf32, #tpu.memory_space<vmem>>, %arg6: memref<128x128xbf16, #tpu.memory_space<vmem>>, %arg7: memref<1x128xf32, #tpu.memory_space<vmem>>, %arg8: memref<8x128xf32, #tpu.memory_space<vmem>>) attributes {dimension_semantics = [#tpu.dimension_semantics<parallel>], iteration_bounds = array<i64: 1>, scalar_prefetch = 0 : i64, scratch_operands = 0 : i64, tpu.core_type = #tpu.core_type<tc>, window_params = [{transform_indices = @transform_0, window_bounds = array<i64: 8, 128>}, {pipeline_mode = #tpu.pipeline_mode<synchronous>, transform_indices = @transform_1, window_bounds = array<i64: 128, 128>}, {pipeline_mode = #tpu.pipeline_mode<synchronous>, transform_indices = @transform_2, window_bounds = array<i64: 1, 128>}, {pipeline_mode = #tpu.pipeline_mode<synchronous>, transform_indices = @transform_3, window_bounds = array<i64: 128, 128>}, {pipeline_mode = #tpu.pipeline_mode<synchronous>, transform_indices = @transform_4, window_bounds = array<i64: 1, 128>}, {pipeline_mode = #tpu.pipeline_mode<synchronous>, transform_indices = @transform_5, window_bounds = array<i64: 128, 128>}, {pipeline_mode = #tpu.pipeline_mode<synchronous>, transform_indices = @transform_6, window_bounds = array<i64: 1, 128>}, {transform_indices = @transform_7, window_bounds = array<i64: 8, 128>}]} {
    %c0 = arith.constant 0 : index
    %c0_0 = arith.constant 0 : index
    %0 = vector.load %arg1[%c0, %c0_0] : memref<8x128xf32, #tpu.memory_space<vmem>>, vector<8x128xf32>
    %1 = arith.truncf %0 : vector<8x128xf32> to vector<8x128xbf16>
    %c0_1 = arith.constant 0 : index
    %c0_2 = arith.constant 0 : index
    %2 = vector.load %arg2[%c0_1, %c0_2] : memref<128x128xbf16, #tpu.memory_space<vmem>>, vector<128x128xbf16>
    %cst = arith.constant dense<0.000000e+00> : vector<8x128xf32>
    %3 = tpu.matmul %1, %2, %cst {dimension_numbers = #tpu.dot_dimension_numbers<[1], [0], [0], [1], [0, 0, 1, 1], [], []>} : vector<8x128xbf16>, vector<128x128xbf16>, vector<8x128xf32> -> vector<8x128xf32>
    %c0_3 = arith.constant 0 : index
    %c0_4 = arith.constant 0 : index
    %4 = vector.load %arg3[%c0_3, %c0_4] : memref<1x128xf32, #tpu.memory_space<vmem>>, vector<1x128xf32>
    %5 = vector.broadcast %4 : vector<1x128xf32> to vector<8x128xf32>
    %6 = arith.addf %3, %5 : vector<8x128xf32>
    %cst_5 = arith.constant 0.000000e+00 : f32
    %7 = vector.broadcast %cst_5 : f32 to vector<8x128xf32>
    %8 = arith.maximumf %6, %7 : vector<8x128xf32>
    %9 = arith.truncf %8 : vector<8x128xf32> to vector<8x128xbf16>
    %c0_6 = arith.constant 0 : index
    %c0_7 = arith.constant 0 : index
    %10 = vector.load %arg4[%c0_6, %c0_7] : memref<128x128xbf16, #tpu.memory_space<vmem>>, vector<128x128xbf16>
    %cst_8 = arith.constant dense<0.000000e+00> : vector<8x128xf32>
    %11 = tpu.matmul %9, %10, %cst_8 {dimension_numbers = #tpu.dot_dimension_numbers<[1], [0], [0], [1], [0, 0, 1, 1], [], []>} : vector<8x128xbf16>, vector<128x128xbf16>, vector<8x128xf32> -> vector<8x128xf32>
    %c0_9 = arith.constant 0 : index
    %c0_10 = arith.constant 0 : index
    %12 = vector.load %arg5[%c0_9, %c0_10] : memref<1x128xf32, #tpu.memory_space<vmem>>, vector<1x128xf32>
    %13 = vector.broadcast %12 : vector<1x128xf32> to vector<8x128xf32>
    %14 = arith.addf %11, %13 : vector<8x128xf32>
    %cst_11 = arith.constant 0.000000e+00 : f32
    %15 = vector.broadcast %cst_11 : f32 to vector<8x128xf32>
    %16 = arith.maximumf %14, %15 : vector<8x128xf32>
    %17 = arith.truncf %16 : vector<8x128xf32> to vector<8x128xbf16>
    %c0_12 = arith.constant 0 : index
    %c0_13 = arith.constant 0 : index
    %18 = vector.load %arg6[%c0_12, %c0_13] : memref<128x128xbf16, #tpu.memory_space<vmem>>, vector<128x128xbf16>
    %cst_14 = arith.constant dense<0.000000e+00> : vector<8x128xf32>
    %19 = tpu.matmul %17, %18, %cst_14 {dimension_numbers = #tpu.dot_dimension_numbers<[1], [0], [0], [1], [0, 0, 1, 1], [], []>} : vector<8x128xbf16>, vector<128x128xbf16>, vector<8x128xf32> -> vector<8x128xf32>
    %c0_15 = arith.constant 0 : index
    %c0_16 = arith.constant 0 : index
    %20 = vector.load %arg7[%c0_15, %c0_16] : memref<1x128xf32, #tpu.memory_space<vmem>>, vector<1x128xf32>
    %21 = vector.broadcast %20 : vector<1x128xf32> to vector<8x128xf32>
    %22 = arith.addf %19, %21 : vector<8x128xf32>
    %23 = math.tanh %22 : vector<8x128xf32>
    %c0_17 = arith.constant 0 : index
    %c0_18 = arith.constant 0 : index
    %24 = vector.load %arg8[%c0_17, %c0_18] : memref<8x128xf32, #tpu.memory_space<vmem>>, vector<8x128xf32>
    tpu.vector_store %arg8[%c0_17, %c0_18], %23 {strides = array<i32>} : memref<8x128xf32, #tpu.memory_space<vmem>>, vector<8x128xf32>,
    return
  }
  func.func @transform_0(%arg0: i32) -> (i32, i32) {
    %c0_i32 = arith.constant 0 : i32
    %c0_i32_0 = arith.constant 0 : i32
    return %arg0, %c0_i32 : i32, i32
  }
  func.func @transform_1(%arg0: i32) -> (i32, i32) {
    %c0_i32 = arith.constant 0 : i32
    %c0_i32_0 = arith.constant 0 : i32
    %c0_i32_1 = arith.constant 0 : i32
    return %c0_i32, %c0_i32_0 : i32, i32
  }
  func.func @transform_2(%arg0: i32) -> (i32, i32) {
    %c0_i32 = arith.constant 0 : i32
    %c0_i32_0 = arith.constant 0 : i32
    %c0_i32_1 = arith.constant 0 : i32
    return %c0_i32, %c0_i32_0 : i32, i32
  }
  func.func @transform_3(%arg0: i32) -> (i32, i32) {
    %c0_i32 = arith.constant 0 : i32
    %c0_i32_0 = arith.constant 0 : i32
    %c0_i32_1 = arith.constant 0 : i32
    return %c0_i32, %c0_i32_0 : i32, i32
  }
  func.func @transform_4(%arg0: i32) -> (i32, i32) {
    %c0_i32 = arith.constant 0 : i32
    %c0_i32_0 = arith.constant 0 : i32
    %c0_i32_1 = arith.constant 0 : i32
    return %c0_i32, %c0_i32_0 : i32, i32
  }
  func.func @transform_5(%arg0: i32) -> (i32, i32) {
    %c0_i32 = arith.constant 0 : i32
    %c0_i32_0 = arith.constant 0 : i32
    %c0_i32_1 = arith.constant 0 : i32
    return %c0_i32, %c0_i32_0 : i32, i32
  }
  func.func @transform_6(%arg0: i32) -> (i32, i32) {
    %c0_i32 = arith.constant 0 : i32
    %c0_i32_0 = arith.constant 0 : i32
    %c0_i32_1 = arith.constant 0 : i32
    return %c0_i32, %c0_i32_0 : i32, i32
  }
  func.func @transform_7(%arg0: i32) -> (i32, i32) {
    %c0_i32 = arith.constant 0 : i32
    %c0_i32_0 = arith.constant 0 : i32
    return %arg0, %c0_i32 : i32, i32
  }
}

</mosaic_0001>

<bundles_post_ra>
// kernel: _actor_forward.1
= control target key start
LH: loop header
LB: loop body
LE: loop exit
PB: predicated region body
PF: predicated region fallthrough
CT: control target
= control target key end

     0   :  { %v548_v1 = vmov 0.0   ;;  %vm549_vm0 = vmmov 0   ;;  %s708_s0 = inlined_call_operand.vmem [shape: f32[8,128], index: 0, kind: input, shape index: {}]   ;;  %s709_s1 = inlined_call_operand.vmem [shape: bf16[128,128], index: 1, kind: input, shape index: {}]   ;;  %s710_s2 = inlined_call_operand.vmem [shape: f32[1,128], index: 2, kind: input, shape index: {}]   ;;  %s711_s3 = inlined_call_operand.vmem [shape: bf16[128,128], index: 3, kind: input, shape index: {}]   ;;  %s712_s4 = inlined_call_operand.vmem [shape: f32[1,128], index: 4, kind: input, shape index: {}]   ;;  %s713_s5 = inlined_call_operand.vmem [shape: bf16[128,128], index: 5, kind: input, shape index: {}]   ;;  %s714_s6 = inlined_call_operand.vmem [shape: f32[1,128], index: 6, kind: input, shape index: {}]   ;;  %s715_s7 = inlined_call_operand.hbm [shape: f32[8,128], index: 7, kind: output, shape index: {}]  }
   0x1   :  { %v500_v0 = vld [vmem:[%s709_s1 + $0x38] sm:$0xff]   ;;  %437 = vmatprep.subr.bf16.mxu0 %v548_v1  ;;  %457 = vmatprep.subr.bf16.mxu1 %v548_v1  ;;  %v501_v2 = vld [vmem:[%s709_s1 + $0x30] sm:$0xff]   ;;  %v502_v3 = vld [vmem:[%s709_s1 + $0x28] sm:$0xff]  }
   0x2   :  { %438 = vmatpush3.bf16.msra.mxu0 %v500_v0  ;;  %453 = vmatprep.mubr.msk.bf16.mxu0 %vm549_vm0, %v548_v1  ;;  %v508_v4 = vld [vmem:[%s711_s3 + $0x38] sm:$0xff]   ;;  %v503_v5 = vld [vmem:[%s709_s1 + $0x20] sm:$0xff]   ;;  %v509_v6 = vld [vmem:[%s711_s3 + $0x30] sm:$0xff]  }
   0x3   :  { %439 = vmatprep.subr.bf16.mxu0 %v548_v1  ;;  %473 = vmatprep.mubr.msk.bf16.mxu1 %vm549_vm0, %v548_v1  ;;  %v504_v7 = vld [vmem:[%s709_s1 + $0x18] sm:$0xff]   ;;  %v510_v8 = vld [vmem:[%s711_s3 + $0x28] sm:$0xff]   ;;  %v505_v9 = vld [vmem:[%s709_s1 + $0x10] sm:$0xff]  }
   0x4   :  { %458 = vmatpush3.bf16.msra.mxu1 %v508_v4  ;;  %v511_v10 = vld [vmem:[%s711_s3 + $0x20] sm:$0xff]  }
   0x5   :  { %459 = vmatprep.subr.bf16.mxu1 %v548_v1 }
   0x6   :  { %440 = vmatpush3.bf16.msra.mxu0 %v501_v2 }
   0x7   :  { %441 = vmatprep.subr.bf16.mxu0 %v548_v1 }
   0x8   :  { %460 = vmatpush3.bf16.msra.mxu1 %v509_v6 }
   0x9   :  { %461 = vmatprep.subr.bf16.mxu1 %v548_v1 }
   0xa   :  { %442 = vmatpush3.bf16.msra.mxu0 %v502_v3 }
   0xb   :  { %443 = vmatprep.subr.bf16.mxu0 %v548_v1 }
   0xc   :  { %462 = vmatpush3.bf16.msra.mxu1 %v510_v8 }
   0xd   :  { %463 = vmatprep.subr.bf16.mxu1 %v548_v1 }
   0xe   :  { %444 = vmatpush3.bf16.msra.mxu0 %v503_v5 }
   0xf   :  { %445 = vmatprep.subr.bf16.mxu0 %v548_v1 }
  0x12   :  { %446 = vmatpush3.bf16.msra.mxu0 %v504_v7 }
  0x13   :  { %447 = vmatprep.subr.bf16.mxu0 %v548_v1 }
  0x14   :  { %12 = vsyncpa [#allocation3], 0  ;;  %v506_v11 = vld [vmem:[%s709_s1 + $0x8] sm:$0xff]   ;;  %464 = vmatpush3.bf16.msra.mxu1 %v511_v10  ;;  %v512_v12 = vld [vmem:[%s711_s3 + $0x18] sm:$0xff]  }
  0x15   :  { %465 = vmatprep.subr.bf16.mxu1 %v548_v1  ;;  %v507_v13 = vld [vmem:[%s709_s1] sm:$0xff]   ;;  %v513_v15 = vld [vmem:[%s711_s3 + $0x10] sm:$0xff]   ;;  %v514_v17 = vld [vmem:[%s711_s3 + $0x8] sm:$0xff]  }
  0x16   :  { %448 = vmatpush3.bf16.msra.mxu0 %v505_v9  ;;  %v28_v14 = vld [vmem:[%s708_s0] sm:$0xff]  ;;  %v516_v19 = vld [vmem:[%s713_s5 + $0x38] sm:$0xff]   ;;  %v517_v20 = vld [vmem:[%s713_s5 + $0x30] sm:$0xff]  }
  0x17   :  { %449 = vmatprep.subr.bf16.mxu0 %v548_v1  ;;  %v29_v16 = vpack.c.bf16 %v28_v14, %v28_v14  ;;  %v515_v18 = vld [vmem:[%s711_s3] sm:$0xff]   ;;  %v518_v21 = vld [vmem:[%s713_s5 + $0x28] sm:$0xff]   ;;  %v520_v23 = vld [vmem:[%s713_s5 + $0x18] sm:$0xff]  }
  0x18   :  { %466 = vmatpush3.bf16.msra.mxu1 %v512_v12  ;;  %v519_v22 = vld [vmem:[%s713_s5 + $0x20] sm:$0xff]   ;;  %v521_v24 = vld [vmem:[%s713_s5 + $0x10] sm:$0xff]   ;;  %v522_v33 = vld [vmem:[%s713_s5 + $0x8] sm:$0xff]  }
  0x19   :  { %467 = vmatprep.subr.bf16.mxu1 %v548_v1  ;;  %v383_v25 = vld [vmem:[%s710_s2] ss:$0 sm:$0xff] }
  0x1a   :  { %450 = vmatpush3.bf16.msra.mxu0 %v506_v11  ;;  %v523_v34 = vld [vmem:[%s713_s5] sm:$0xff]   ;;  %s550_s5 = smov [#allocation2]  }
  0x1b   :  { %451 = vmatprep.subr.bf16.mxu0 %v548_v1  ;;  %v392_v35 = vld [vmem:[%s712_s4] ss:$0 sm:$0xff]  ;;  %s375_s4 = sshll.u32 %s550_s5, 4  ;;  %s376_s4 = int_to_ptr.vmem [resolvable:$true] %s375_s4 }
  0x1c   :  { %468 = vmatpush3.bf16.msra.mxu1 %v513_v15  ;;  %v401_v43 = vld [vmem:[%s714_s6] ss:$0 sm:$0xff]  ;;  %s526_s30 = scalar_lea.vmem %s376_s4, 128  ;;  %p531_p1 = scmp.lt.s32.totalorder %s376_s4, %s376_s4 }
  0x1d   :  { %469 = vmatprep.subr.bf16.mxu1 %v548_v1  ;;  %p527_p0 = scmp.ne.s32.totalorder %s376_s4, %s526_s30  ;;  %p532_p2 = scmp.lt.s32.totalorder %s526_s30, %s526_s30 }
  0x1e   :  { %452 = vmatpush3.bf16.msra.mxu0 %v507_v13 }
  0x1f   :  { %477 = vmatprep.subr.bf16.mxu0 %v548_v1  ;;  %p533_p3 = por %p532_p2, %p531_p1 }
  0x20   :  { %470 = vmatpush3.bf16.msra.mxu1 %v514_v17 }
  0x21   :  { %454 = vmatmul.mubr.bf16.vlgmr.msra.gmra.mxu0 %v29_v16  ;;  %471 = vmatprep.subr.bf16.mxu1 %v548_v1  ;;  %p534_p4 = pnand %p533_p3, %p527_p0 }
  0x22   :  { %493 = vmatprep.mubr.msk.bf16.mxu0 %vm549_vm0, %v548_v1  ;;  %478 = vmatpush3.bf16.msra.mxu0 %v516_v19 }
  0x23   :  { %479 = vmatprep.subr.bf16.mxu0 %v548_v1 }
  0x24   :  { %472 = vmatpush3.bf16.msra.mxu1 %v515_v18 }
  0x26   :  { %480 = vmatpush3.bf16.msra.mxu0 %v517_v20 }
  0x27   :  { %481 = vmatprep.subr.bf16.mxu0 %v548_v1 }
  0x2a   :  { %482 = vmatpush3.bf16.msra.mxu0 %v518_v21 }
  0x2b   :  { %483 = vmatprep.subr.bf16.mxu0 %v548_v1 }
  0x2e   :  { %484 = vmatpush3.bf16.msra.mxu0 %v519_v22 }
  0x2f   :  { %485 = vmatprep.subr.bf16.mxu0 %v548_v1 }
  0x32   :  { %486 = vmatpush3.bf16.msra.mxu0 %v520_v23 }
  0x33   :  { %487 = vmatprep.subr.bf16.mxu0 %v548_v1 }
  0x36   :  { %488 = vmatpush3.bf16.msra.mxu0 %v521_v24 }
  0x37   :  { %489 = vmatprep.subr.bf16.mxu0 %v548_v1 }
  0x3a   :  { %490 = vmatpush3.bf16.msra.mxu0 %v522_v33 }
  0x3b   :  { %491 = vmatprep.subr.bf16.mxu0 %v548_v1 }
  0x3e   :  { %492 = vmatpush3.bf16.msra.mxu0 %v523_v34 }
  0xe1   :  { %v135_v26 = vpop.f32.mrf.mxu0 }
  0xe2   :  { %v136_v27 = vadd.f32 %v383_v25, %v135_v26 }
  0xe3   :  { %v455_v28 = vpop.f32.mrf.mxu0 }
  0xe4   :  { %v141_v29 = vmax.f32 %v136_v27, 0.0 }
  0xe5   :  { %v138_v30 = vpop.f32.mrf.mxu0 }
  0xe6   :  { %v142_v31 = vpack.c.bf16 %v141_v29, %v141_v29 }
  0xe7   :  { %v456_v32 = vpop.f32.mrf.mxu0 }
  0xe8   :  { %474 = vmatmul.mubr.bf16.vlgmr.msra.gmra.mxu1 %v142_v31 }
 0x1a8   :  { %v248_v36 = vpop.f32.mrf.mxu1 }
 0x1a9   :  { %v249_v37 = vadd.f32 %v392_v35, %v248_v36 }
 0x1aa   :  { %v475_v38 = vpop.f32.mrf.mxu1 }
 0x1ab   :  { %v254_v39 = vmax.f32 %v249_v37, 0.0 }
 0x1ac   :  { %v251_v40 = vpop.f32.mrf.mxu1 }
 0x1ad   :  { %v255_v41 = vpack.c.bf16 %v254_v39, %v254_v39 }
 0x1ae   :  { %v476_v42 = vpop.f32.mrf.mxu1 }
 0x1af   :  { %494 = vmatmul.mubr.bf16.vlgmr.msra.gmra.mxu0 %v255_v41 }
 0x26f   :  { %v361_v44 = vpop.f32.mrf.mxu0 }
 0x270   :  { %v362_v45 = vadd.f32 %v401_v43, %v361_v44 }
 0x271   :  { %v495_v46 = vpop.f32.mrf.mxu0 }
 0x272   :  { %524 = vtanh.f32 %v362_v45 }
 0x273   :  { %v364_v47 = vpop.f32.mrf.mxu0 }
 0x275   :  { %v496_v48 = vpop.f32.mrf.mxu0 }
 0x27f   :  { %v525_v49 = vpop.eup %524 }
 0x280   :  { %368 = vst [vmem:[#allocation2] sm:$0xff] %v525_v49 }
 0x281   :  { %537 = shalt.err (!%p534_p4)
}
 0x282   :  { %378 = dma.vmem_to_hbm [thread:$0]  %s376_s4, 128, %s715_s7, [#allocation3]  }
 0x283   :  { %546 = dma.done.wait [#allocation3], 128  }
 0x284   :  { %547 = vsyncadd [#allocation3], 4294967168 }
 0x285   :  { %382 = vsyncpa [#allocation3], 1 }

</bundles_post_ra>
